<compile_context>
chip_gen: v6e
topology: v6e:2x2x1
jax: 0.10.0
libtpu: 0.0.40
codegen_flags: <defaults>
</compile_context>

<pallas_src>
import functools

import jax
import jax.numpy as jnp
from jax.experimental import pallas as pl
from jax.experimental.pallas import tpu as pltpu


_LANES = 128
_MAX_STAT_ROWS = 8192          # (rows,128) f32 stats block = 4 MiB
_MAX_APPLY_ROWS = 2048         # per-channel apply plane = 1 MiB
_FUSED_VMEM_BUDGET = 24 << 20  # static estimate threshold for the fused path
_FUSED_VMEM_LIMIT = 48 << 20   # < v7x 64 MiB physical
_FALLBACK_VMEM_LIMIT = 32 << 20


def _round_up(n, m):
    return ((n + m - 1) // m) * m


# --------------------------- fused single-pass kernel ------------------------

def _make_fused_kernel(c_in, c_out, cnt, pad_total):
    """Whole image resident in VMEM: stats + folded 1x1 conv + ReLU in one pass."""
    cnt_f = float(cnt)
    pad_f = float(pad_total)

    def kernel(wb_ref, x_ref, o_ref):
        # wb_ref: (C_out, C_in+1) raw conv params, last column = bias
        # x_ref : (1, C_in, rows, 128) zero-padded image
        # o_ref : (1, C_out, rows, 128)
        x = x_ref[0].astype(jnp.float32)                   # (C, rows, 128)
        mean = jnp.sum(x) * (1.0 / cnt_f)                  # zeros in pad add 0
        xc = x - mean                                      # centered copy (stable)
        ss = jnp.sum(xc * xc) - pad_f * (mean * mean)      # remove pad's (-mean)^2
        var = ss * (1.0 / (cnt_f - 1.0))                   # unbiased, like torch .std()
        inv = 1.0 / (jnp.sqrt(jnp.maximum(var, 0.0)) + 1e-6)
        wb = wb_ref[...].astype(jnp.float32)               # (C_out, C_in+1)
        for o in range(c_out):
            acc = wb[o:o + 1, 0:1] * xc[0]                 # (rows,128) VPU FMAs
            for c in range(1, c_in):
                acc = acc + wb[o:o + 1, c:c + 1] * xc[c]
            y = inv * acc + wb[o:o + 1, c_in:c_in + 1]
            o_ref[0, o, :, :] = jnp.maximum(y, 0.0).astype(o_ref.dtype)

    return kernel


def _fused_call(x4, w, b, true_hw):
    N, C, rows, L = x4.shape
    C_out = w.shape[0]
    cnt = C * true_hw
    pad_total = C * (rows * L - true_hw)
    wb0 = jnp.concatenate(
        [w.astype(jnp.float32), b.astype(jnp.float32)[:, None]], axis=1)  # (C_out, C+1)
    kernel = _make_fused_kernel(C, C_out, cnt, pad_total)
    return pl.pallas_call(
        kernel,
        out_shape=jax.ShapeDtypeStruct((N, C_out, rows, L), x4.dtype),
        grid_spec=pltpu.PrefetchScalarGridSpec(
            num_scalar_prefetch=0,
            grid=(N,),
            in_specs=[
                pl.BlockSpec((C_out, C + 1), lambda n: (0, 0)),
                pl.BlockSpec((1, C, rows, L), lambda n: (n, 0, 0, 0)),
            ],
            out_specs=pl.BlockSpec((1, C_out, rows, L), lambda n: (n, 0, 0, 0)),
        ),
        compiler_params=pltpu.CompilerParams(
            dimension_semantics=("parallel",),
            vmem_limit_bytes=_FUSED_VMEM_LIMIT),
    )(wb0, x4)


# -------------------- two-pass fallback (very large images) ------------------

def _stats_kernel(x_ref, s_ref):
    # x_ref: (1, r_tile, 128) lane-dense image rows
    # s_ref: (1, 1, 2, 128) resident per-(image, half) accumulator:
    #        row 0 = per-lane sum, row 1 = per-lane sum of squares
    @pl.when(pl.program_id(2) == 0)
    def _():
        s_ref[...] = jnp.zeros_like(s_ref)

    x = x_ref[0].astype(jnp.float32)
    s_ref[0, 0, 0:1, :] += jnp.sum(x, axis=0, keepdims=True)
    s_ref[0, 0, 1:2, :] += jnp.sum(x * x, axis=0, keepdims=True)


def _apply_kernel(wb_ref, x_ref, o_ref):
    # wb_ref: (1, C_out, C_in+1) per-image folded params (last column = bias)
    # x_ref : (1, C_in, rt, 128) ; o_ref: (1, C_out, rt, 128)
    c_in = x_ref.shape[1]
    c_out = o_ref.shape[1]
    x = x_ref[0].astype(jnp.float32)
    wb = wb_ref[0].astype(jnp.float32)
    for o in range(c_out):
        acc = wb[o:o + 1, 0:1] * x[0]
        for c in range(1, c_in):
            acc = acc + wb[o:o + 1, c:c + 1] * x[c]
        acc = acc + wb[o:o + 1, c_in:c_in + 1]
        o_ref[0, o, :, :] = jnp.maximum(acc, 0.0).astype(o_ref.dtype)


def _two_pass_call(x4, w, b, true_hw):
    N, C, rows, L = x4.shape
    C_out = w.shape[0]
    cnt = float(C * true_hw)

    # ---- pass 1: per-lane partial sum / sumsq over a lane-dense (R,128) view.
    # Middle grid axis of extent 2 keeps both v7x TensorCores busy at N=1.
    R = C * rows
    r_tile = min(_MAX_STAT_ROWS, _round_up(R, 8))
    R2 = _round_up(R, 2 * r_tile)
    n_half = R2 // (2 * r_tile)
    x_st = x4.reshape(N, R, L)
    if R2 != R:
        x_st = jnp.pad(x_st, ((0, 0), (0, R2 - R), (0, 0)))  # zeros are stats-safe

    stats = pl.pallas_call(
        _stats_kernel,
        out_shape=jax.ShapeDtypeStruct((N, 2, 2, L), jnp.float32),
        grid_spec=pltpu.PrefetchScalarGridSpec(
            num_scalar_prefetch=0,
            grid=(N, 2, n_half),
            in_specs=[pl.BlockSpec((1, r_tile, L),
                                   lambda n, p, t: (n, p * n_half + t, 0))],
            out_specs=pl.BlockSpec((1, 1, 2, L), lambda n, p, t: (n, p, 0, 0)),
        ),
        compiler_params=pltpu.CompilerParams(
            dimension_semantics=("parallel", "parallel", "arbitrary"),
            vmem_limit_bytes=_FALLBACK_VMEM_LIMIT),
    )(x_st)

    # ---- fold standardization into the conv params (tiny O(N*C_out*C_in)).
    # NOTE: E[x^2]-E[x]^2 single pass; the 128-way lane partials limit the f32
    # cancellation error, but the fused path (centered second pass) is exact.
    s1 = jnp.sum(stats[:, :, 0, :], axis=(1, 2))
    s2 = jnp.sum(stats[:, :, 1, :], axis=(1, 2))
    mean = s1 / cnt
    var = (s2 - cnt * mean * mean) / (cnt - 1.0)
    inv = 1.0 / (jnp.sqrt(jnp.maximum(var, 0.0)) + 1e-6)
    w32 = w.astype(jnp.float32)
    b32 = b.astype(jnp.float32)
    wf = w32[None, :, :] * inv[:, None, None]                                  # (N,C_out,C)
    bf = b32[None, :] - (inv * mean)[:, None] * jnp.sum(w32, axis=1)[None, :]  # (N,C_out)
    wb = jnp.concatenate([wf, bf[:, :, None]], axis=2)                         # (N,C_out,C+1)

    # ---- pass 2: folded 1x1 conv + ReLU over dense (rows,128) planes.
    rt = min(_MAX_APPLY_ROWS, _round_up(rows, 8))
    rows2 = _round_up(rows, rt)
    n_t = rows2 // rt
    x_ap = x4
    if rows2 != rows:
        x_ap = jnp.pad(x4, ((0, 0), (0, 0), (0, rows2 - rows), (0, 0)))

    out = pl.pallas_call(
        _apply_kernel,
        out_shape=jax.ShapeDtypeStruct((N, C_out, rows2, L), x4.dtype),
        grid_spec=pltpu.PrefetchScalarGridSpec(
            num_scalar_prefetch=0,
            grid=(N, n_t),
            in_specs=[
                pl.BlockSpec((1, C_out, C + 1), lambda n, t: (n, 0, 0)),
                pl.BlockSpec((1, C, rt, L), lambda n, t: (n, 0, t, 0)),
            ],
            out_specs=pl.BlockSpec((1, C_out, rt, L), lambda n, t: (n, 0, t, 0)),
        ),
        compiler_params=pltpu.CompilerParams(
            dimension_semantics=("parallel", "parallel"),
            vmem_limit_bytes=_FALLBACK_VMEM_LIMIT),
    )(wb, x_ap)
    return out[:, :, :rows, :]


# --------------------------------- wrapper -----------------------------------

def channel_mapper_forward(x_nchw, w, b, *, force_two_pass=False):
    """x_nchw: (N, C_in, H, W).  w: (C_out, C_in).  b: (C_out,).

    Returns (N, C_out, H, W) ==
        [relu(conv1x1((img - img.mean()) / (img.std(ddof=1) + 1e-6))) for img in x]
    """
    N, C, H, W = x_nchw.shape
    C_out = w.shape[0]
    HW = H * W
    HW_pad = _round_up(HW, _LANES)
    rows = HW_pad // _LANES

    x_flat = x_nchw.reshape(N, C, HW)
    if HW_pad != HW:
        x_flat = jnp.pad(x_flat, ((0, 0), (0, 0), (0, HW_pad - HW)))
    x4 = x_flat.reshape(N, C, rows, _LANES)

    # static per-image VMEM estimate: x (double-buffered) + centered copy +
    # output (double-buffered), all f32
    fused_est = 4 * HW_pad * (3 * C + 2 * C_out)
    if (not force_two_pass) and fused_est <= _FUSED_VMEM_BUDGET:
        out4 = _fused_call(x4, w, b, HW)
    else:
        out4 = _two_pass_call(x4, w, b, HW)

    return out4.reshape(N, C_out, HW_pad)[:, :, :HW].reshape(N, C_out, H, W)


def _reference(x_nchw, w, b):
    """Pure-JAX reference matching the PyTorch semantics exactly."""
    outs = []
    for i in range(x_nchw.shape[0]):
        img = x_nchw[i].astype(jnp.float32)               # (C, H, W)
        mean = jnp.mean(img)
        std = jnp.std(img, ddof=1)                        # unbiased, like torch
        imgn = (img - mean) / (std + 1e-6)
        y = jnp.einsum("oc,chw->ohw", w, imgn) + b[:, None, None]
        outs.append(jnp.maximum(y, 0.0))
    return jnp.stack(outs, axis=0)


if __name__ == "__main__":
    # Small shapes consistent with the module: batch=2, input_channels=4, 16x16 images.
    N, C_IN, H, W = 2, 4, 16, 16
    C_OUT = 3  # channel_mapper maps input_channels -> 3

    key = jax.random.PRNGKey(0)
    kx, kw, kb = jax.random.split(key, 3)
    # Non-zero mean / non-unit std so the standardization path is really exercised.
    x = jax.random.normal(kx, (N, C_IN, H, W), dtype=jnp.float32) * 3.0 + 5.0
    w = jax.random.normal(kw, (C_OUT, C_IN), dtype=jnp.float32) * 0.5
    b = jax.random.normal(kb, (C_OUT,), dtype=jnp.float32) * 0.1

    fused = jax.jit(channel_mapper_forward)
    two_pass = jax.jit(functools.partial(channel_mapper_forward, force_two_pass=True))

    out_fused = jax.block_until_ready(fused(x, w, b))
    out_two = jax.block_until_ready(two_pass(x, w, b))

    ref = _reference(x, w, b)
    assert out_fused.shape == (N, C_OUT, H, W)
    assert jnp.allclose(out_fused, ref, atol=1e-4, rtol=1e-4), "fused path mismatch"
    assert jnp.allclose(out_two, ref, atol=1e-4, rtol=1e-4), "two-pass path mismatch"

    print("KERNEL_OK")
</pallas_src>

<mosaic_0001>
module attributes {stable_mosaic.version = 11 : i64} {
  func.func @kernel(%arg0: i32, %arg1: memref<3x5xf32, #tpu.memory_space<vmem>>, %arg2: memref<1x4x2x128xf32, #tpu.memory_space<vmem>>, %arg3: memref<1x3x2x128xf32, #tpu.memory_space<vmem>>) attributes {dimension_semantics = [#tpu.dimension_semantics<parallel>], iteration_bounds = array<i64: 2>, scalar_prefetch = 0 : i64, scratch_operands = 0 : i64, tpu.core_type = #tpu.core_type<tc>, window_params = [{pipeline_mode = #tpu.pipeline_mode<synchronous>, transform_indices = @transform_0, window_bounds = array<i64: 3, 5>}, {transform_indices = @transform_1, window_bounds = array<i64: 1, 4, 2, 128>}, {transform_indices = @transform_2, window_bounds = array<i64: 1, 3, 2, 128>}]} {
    %c0 = arith.constant 0 : index
    %c0_0 = arith.constant 0 : index
    %c0_1 = arith.constant 0 : index
    %c0_2 = arith.constant 0 : index
    %0 = vector.load %arg2[%c0, %c0_0, %c0_1, %c0_2] : memref<1x4x2x128xf32, #tpu.memory_space<vmem>>, vector<1x4x2x128xf32>
    %1 = vector.shape_cast %0 : vector<1x4x2x128xf32> to vector<4x2x128xf32>
    %2 = vector.shape_cast %1 : vector<4x2x128xf32> to vector<1x4x2x128xf32>
    %cst = arith.constant dense<0.000000e+00> : vector<1xf32>
    %3 = vector.multi_reduction <add>, %2, %cst [1, 2, 3] : vector<1x4x2x128xf32> to vector<1xf32>
    %4 = vector.shape_cast %3 : vector<1xf32> to vector<1x1x1x1xf32>
    %5 = vector.extract %4[0, 0, 0, 0] : f32 from vector<1x1x1x1xf32>
    %cst_3 = arith.constant 9.765625E-4 : f32
    %6 = arith.mulf %5, %cst_3 : f32
    %7 = vector.broadcast %6 : f32 to vector<4x2x128xf32>
    %8 = arith.subf %1, %7 : vector<4x2x128xf32>
    %9 = arith.mulf %8, %8 : vector<4x2x128xf32>
    %10 = vector.shape_cast %9 : vector<4x2x128xf32> to vector<1x4x2x128xf32>
    %cst_4 = arith.constant dense<0.000000e+00> : vector<1xf32>
    %11 = vector.multi_reduction <add>, %10, %cst_4 [1, 2, 3] : vector<1x4x2x128xf32> to vector<1xf32>
    %12 = vector.shape_cast %11 : vector<1xf32> to vector<1x1x1x1xf32>
    %13 = vector.extract %12[0, 0, 0, 0] : f32 from vector<1x1x1x1xf32>
    %14 = arith.mulf %6, %6 : f32
    %cst_5 = arith.constant 0.000000e+00 : f32
    %15 = arith.mulf %cst_5, %14 : f32
    %16 = arith.subf %13, %15 : f32
    %cst_6 = arith.constant 9.77517105E-4 : f32
    %17 = arith.mulf %16, %cst_6 : f32
    %cst_7 = arith.constant 0.000000e+00 : f32
    %18 = arith.maximumf %17, %cst_7 : f32
    %19 = math.sqrt %18 : f32
    %cst_8 = arith.constant 9.99999997E-7 : f32
    %20 = arith.addf %19, %cst_8 : f32
    %cst_9 = arith.constant 1.000000e+00 : f32
    %21 = arith.divf %cst_9, %20 : f32
    %c0_10 = arith.constant 0 : index
    %c0_11 = arith.constant 0 : index
    %22 = vector.load %arg1[%c0_10, %c0_11] : memref<3x5xf32, #tpu.memory_space<vmem>>, vector<3x5xf32>
    %23 = vector.extract_strided_slice %22 {offsets = [0, 0], sizes = [1, 1], strides = [1, 1]} : vector<3x5xf32> to vector<1x1xf32>
    %24 = vector.extract_strided_slice %8 {offsets = [0, 0, 0], sizes = [1, 2, 128], strides = [1, 1, 1]} : vector<4x2x128xf32> to vector<1x2x128xf32>
    %25 = vector.shape_cast %24 : vector<1x2x128xf32> to vector<2x128xf32>
    %26 = vector.broadcast %23 : vector<1x1xf32> to vector<2x128xf32>
    %27 = arith.mulf %26, %25 : vector<2x128xf32>
    %28 = vector.extract_strided_slice %22 {offsets = [0, 1], sizes = [1, 1], strides = [1, 1]} : vector<3x5xf32> to vector<1x1xf32>
    %29 = vector.extract_strided_slice %8 {offsets = [1, 0, 0], sizes = [1, 2, 128], strides = [1, 1, 1]} : vector<4x2x128xf32> to vector<1x2x128xf32>
    %30 = vector.shape_cast %29 : vector<1x2x128xf32> to vector<2x128xf32>
    %31 = vector.broadcast %28 : vector<1x1xf32> to vector<2x128xf32>
    %32 = arith.mulf %31, %30 : vector<2x128xf32>
    %33 = arith.addf %27, %32 : vector<2x128xf32>
    %34 = vector.extract_strided_slice %22 {offsets = [0, 2], sizes = [1, 1], strides = [1, 1]} : vector<3x5xf32> to vector<1x1xf32>
    %35 = vector.extract_strided_slice %8 {offsets = [2, 0, 0], sizes = [1, 2, 128], strides = [1, 1, 1]} : vector<4x2x128xf32> to vector<1x2x128xf32>
    %36 = vector.shape_cast %35 : vector<1x2x128xf32> to vector<2x128xf32>
    %37 = vector.broadcast %34 : vector<1x1xf32> to vector<2x128xf32>
    %38 = arith.mulf %37, %36 : vector<2x128xf32>
    %39 = arith.addf %33, %38 : vector<2x128xf32>
    %40 = vector.extract_strided_slice %22 {offsets = [0, 3], sizes = [1, 1], strides = [1, 1]} : vector<3x5xf32> to vector<1x1xf32>
    %41 = vector.extract_strided_slice %8 {offsets = [3, 0, 0], sizes = [1, 2, 128], strides = [1, 1, 1]} : vector<4x2x128xf32> to vector<1x2x128xf32>
    %42 = vector.shape_cast %41 : vector<1x2x128xf32> to vector<2x128xf32>
    %43 = vector.broadcast %40 : vector<1x1xf32> to vector<2x128xf32>
    %44 = arith.mulf %43, %42 : vector<2x128xf32>
    %45 = arith.addf %39, %44 : vector<2x128xf32>
    %46 = vector.broadcast %21 : f32 to vector<2x128xf32>
    %47 = arith.mulf %46, %45 : vector<2x128xf32>
    %48 = vector.extract_strided_slice %22 {offsets = [0, 4], sizes = [1, 1], strides = [1, 1]} : vector<3x5xf32> to vector<1x1xf32>
    %49 = vector.broadcast %48 : vector<1x1xf32> to vector<2x128xf32>
    %50 = arith.addf %47, %49 : vector<2x128xf32>
    %cst_12 = arith.constant 0.000000e+00 : f32
    %51 = vector.broadcast %cst_12 : f32 to vector<2x128xf32>
    %52 = arith.maximumf %50, %51 : vector<2x128xf32>
    %c0_13 = arith.constant 0 : index
    %c0_14 = arith.constant 0 : index
    %c0_15 = arith.constant 0 : index
    %c0_16 = arith.constant 0 : index
    %53 = vector.load %arg3[%c0_13, %c0_14, %c0_15, %c0_16] : memref<1x3x2x128xf32, #tpu.memory_space<vmem>>, vector<1x1x2x128xf32>
    %54 = vector.shape_cast %53 : vector<1x1x2x128xf32> to vector<2x128xf32>
    %55 = vector.shape_cast %52 : vector<2x128xf32> to vector<1x1x2x128xf32>
    tpu.vector_store %arg3[%c0_13, %c0_14, %c0_15, %c0_16], %55 {strides = array<i32>} : memref<1x3x2x128xf32, #tpu.memory_space<vmem>>, vector<1x1x2x128xf32>,
    %56 = vector.extract_strided_slice %22 {offsets = [1, 0], sizes = [1, 1], strides = [1, 1]} : vector<3x5xf32> to vector<1x1xf32>
    %57 = vector.extract_strided_slice %8 {offsets = [0, 0, 0], sizes = [1, 2, 128], strides = [1, 1, 1]} : vector<4x2x128xf32> to vector<1x2x128xf32>
    %58 = vector.shape_cast %57 : vector<1x2x128xf32> to vector<2x128xf32>
    %59 = vector.broadcast %56 : vector<1x1xf32> to vector<2x128xf32>
    %60 = arith.mulf %59, %58 : vector<2x128xf32>
    %61 = vector.extract_strided_slice %22 {offsets = [1, 1], sizes = [1, 1], strides = [1, 1]} : vector<3x5xf32> to vector<1x1xf32>
    %62 = vector.extract_strided_slice %8 {offsets = [1, 0, 0], sizes = [1, 2, 128], strides = [1, 1, 1]} : vector<4x2x128xf32> to vector<1x2x128xf32>
    %63 = vector.shape_cast %62 : vector<1x2x128xf32> to vector<2x128xf32>
    %64 = vector.broadcast %61 : vector<1x1xf32> to vector<2x128xf32>
    %65 = arith.mulf %64, %63 : vector<2x128xf32>
    %66 = arith.addf %60, %65 : vector<2x128xf32>
    %67 = vector.extract_strided_slice %22 {offsets = [1, 2], sizes = [1, 1], strides = [1, 1]} : vector<3x5xf32> to vector<1x1xf32>
    %68 = vector.extract_strided_slice %8 {offsets = [2, 0, 0], sizes = [1, 2, 128], strides = [1, 1, 1]} : vector<4x2x128xf32> to vector<1x2x128xf32>
    %69 = vector.shape_cast %68 : vector<1x2x128xf32> to vector<2x128xf32>
    %70 = vector.broadcast %67 : vector<1x1xf32> to vector<2x128xf32>
    %71 = arith.mulf %70, %69 : vector<2x128xf32>
    %72 = arith.addf %66, %71 : vector<2x128xf32>
    %73 = vector.extract_strided_slice %22 {offsets = [1, 3], sizes = [1, 1], strides = [1, 1]} : vector<3x5xf32> to vector<1x1xf32>
    %74 = vector.extract_strided_slice %8 {offsets = [3, 0, 0], sizes = [1, 2, 128], strides = [1, 1, 1]} : vector<4x2x128xf32> to vector<1x2x128xf32>
    %75 = vector.shape_cast %74 : vector<1x2x128xf32> to vector<2x128xf32>
    %76 = vector.broadcast %73 : vector<1x1xf32> to vector<2x128xf32>
    %77 = arith.mulf %76, %75 : vector<2x128xf32>
    %78 = arith.addf %72, %77 : vector<2x128xf32>
    %79 = vector.broadcast %21 : f32 to vector<2x128xf32>
    %80 = arith.mulf %79, %78 : vector<2x128xf32>
    %81 = vector.extract_strided_slice %22 {offsets = [1, 4], sizes = [1, 1], strides = [1, 1]} : vector<3x5xf32> to vector<1x1xf32>
    %82 = vector.broadcast %81 : vector<1x1xf32> to vector<2x128xf32>
    %83 = arith.addf %80, %82 : vector<2x128xf32>
    %cst_17 = arith.constant 0.000000e+00 : f32
    %84 = vector.broadcast %cst_17 : f32 to vector<2x128xf32>
    %85 = arith.maximumf %83, %84 : vector<2x128xf32>
    %c0_18 = arith.constant 0 : index
    %c1 = arith.constant 1 : index
    %c0_19 = arith.constant 0 : index
    %c0_20 = arith.constant 0 : index
    %86 = vector.load %arg3[%c0_18, %c1, %c0_19, %c0_20] : memref<1x3x2x128xf32, #tpu.memory_space<vmem>>, vector<1x1x2x128xf32>
    %87 = vector.shape_cast %86 : vector<1x1x2x128xf32> to vector<2x128xf32>
    %88 = vector.shape_cast %85 : vector<2x128xf32> to vector<1x1x2x128xf32>
    tpu.vector_store %arg3[%c0_18, %c1, %c0_19, %c0_20], %88 {strides = array<i32>} : memref<1x3x2x128xf32, #tpu.memory_space<vmem>>, vector<1x1x2x128xf32>,
    %89 = vector.extract_strided_slice %22 {offsets = [2, 0], sizes = [1, 1], strides = [1, 1]} : vector<3x5xf32> to vector<1x1xf32>
    %90 = vector.extract_strided_slice %8 {offsets = [0, 0, 0], sizes = [1, 2, 128], strides = [1, 1, 1]} : vector<4x2x128xf32> to vector<1x2x128xf32>
    %91 = vector.shape_cast %90 : vector<1x2x128xf32> to vector<2x128xf32>
    %92 = vector.broadcast %89 : vector<1x1xf32> to vector<2x128xf32>
    %93 = arith.mulf %92, %91 : vector<2x128xf32>
    %94 = vector.extract_strided_slice %22 {offsets = [2, 1], sizes = [1, 1], strides = [1, 1]} : vector<3x5xf32> to vector<1x1xf32>
    %95 = vector.extract_strided_slice %8 {offsets = [1, 0, 0], sizes = [1, 2, 128], strides = [1, 1, 1]} : vector<4x2x128xf32> to vector<1x2x128xf32>
    %96 = vector.shape_cast %95 : vector<1x2x128xf32> to vector<2x128xf32>
    %97 = vector.broadcast %94 : vector<1x1xf32> to vector<2x128xf32>
    %98 = arith.mulf %97, %96 : vector<2x128xf32>
    %99 = arith.addf %93, %98 : vector<2x128xf32>
    %100 = vector.extract_strided_slice %22 {offsets = [2, 2], sizes = [1, 1], strides = [1, 1]} : vector<3x5xf32> to vector<1x1xf32>
    %101 = vector.extract_strided_slice %8 {offsets = [2, 0, 0], sizes = [1, 2, 128], strides = [1, 1, 1]} : vector<4x2x128xf32> to vector<1x2x128xf32>
    %102 = vector.shape_cast %101 : vector<1x2x128xf32> to vector<2x128xf32>
    %103 = vector.broadcast %100 : vector<1x1xf32> to vector<2x128xf32>
    %104 = arith.mulf %103, %102 : vector<2x128xf32>
    %105 = arith.addf %99, %104 : vector<2x128xf32>
    %106 = vector.extract_strided_slice %22 {offsets = [2, 3], sizes = [1, 1], strides = [1, 1]} : vector<3x5xf32> to vector<1x1xf32>
    %107 = vector.extract_strided_slice %8 {offsets = [3, 0, 0], sizes = [1, 2, 128], strides = [1, 1, 1]} : vector<4x2x128xf32> to vector<1x2x128xf32>
    %108 = vector.shape_cast %107 : vector<1x2x128xf32> to vector<2x128xf32>
    %109 = vector.broadcast %106 : vector<1x1xf32> to vector<2x128xf32>
    %110 = arith.mulf %109, %108 : vector<2x128xf32>
    %111 = arith.addf %105, %110 : vector<2x128xf32>
    %112 = vector.broadcast %21 : f32 to vector<2x128xf32>
    %113 = arith.mulf %112, %111 : vector<2x128xf32>
    %114 = vector.extract_strided_slice %22 {offsets = [2, 4], sizes = [1, 1], strides = [1, 1]} : vector<3x5xf32> to vector<1x1xf32>
    %115 = vector.broadcast %114 : vector<1x1xf32> to vector<2x128xf32>
    %116 = arith.addf %113, %115 : vector<2x128xf32>
    %cst_21 = arith.constant 0.000000e+00 : f32
    %117 = vector.broadcast %cst_21 : f32 to vector<2x128xf32>
    %118 = arith.maximumf %116, %117 : vector<2x128xf32>
    %c0_22 = arith.constant 0 : index
    %c2 = arith.constant 2 : index
    %c0_23 = arith.constant 0 : index
    %c0_24 = arith.constant 0 : index
    %119 = vector.load %arg3[%c0_22, %c2, %c0_23, %c0_24] : memref<1x3x2x128xf32, #tpu.memory_space<vmem>>, vector<1x1x2x128xf32>
    %120 = vector.shape_cast %119 : vector<1x1x2x128xf32> to vector<2x128xf32>
    %121 = vector.shape_cast %118 : vector<2x128xf32> to vector<1x1x2x128xf32>
    tpu.vector_store %arg3[%c0_22, %c2, %c0_23, %c0_24], %121 {strides = array<i32>} : memref<1x3x2x128xf32, #tpu.memory_space<vmem>>, vector<1x1x2x128xf32>,
    return
  }
  func.func @transform_0(%arg0: i32) -> (i32, i32) {
    %c0_i32 = arith.constant 0 : i32
    %c0_i32_0 = arith.constant 0 : i32
    %c0_i32_1 = arith.constant 0 : i32
    return %c0_i32, %c0_i32_0 : i32, i32
  }
  func.func @transform_1(%arg0: i32) -> (i32, i32, i32, i32) {
    %c0_i32 = arith.constant 0 : i32
    %c0_i32_0 = arith.constant 0 : i32
    %c0_i32_1 = arith.constant 0 : i32
    %c0_i32_2 = arith.constant 0 : i32
    return %arg0, %c0_i32, %c0_i32_0, %c0_i32_1 : i32, i32, i32, i32
  }
  func.func @transform_2(%arg0: i32) -> (i32, i32, i32, i32) {
    %c0_i32 = arith.constant 0 : i32
    %c0_i32_0 = arith.constant 0 : i32
    %c0_i32_1 = arith.constant 0 : i32
    %c0_i32_2 = arith.constant 0 : i32
    return %arg0, %c0_i32, %c0_i32_0, %c0_i32_1 : i32, i32, i32, i32
  }
}

</mosaic_0001>

<bundles_post_ra>
// kernel: channel_mapper_forward.1
= control target key start
LH: loop header
LB: loop body
LE: loop exit
PB: predicated region body
PF: predicated region fallthrough
CT: control target
= control target key end

     0   :  { %s470_s9 = smov 0   ;;  %s541_s0 = inlined_call_operand.vmem [shape: f32[3,5], index: 0, kind: input, shape index: {}]   ;;  %s542_s1 = inlined_call_operand.vmem [shape: f32[2,4,2,128], index: 1, kind: input, shape index: {}]   ;;  %s543_s2 = inlined_call_operand.vmem [shape: f32[2,3,2,128], index: 2, kind: output, shape index: {}]  }
   0x1 LB: > { %s373_s10 = sadd.s32 4294967295, %s448_s9   ;;  %p377_p0 = scmp.ge.s32.totalorder %s448_s9, 1  ;;  %s448_s9 = sphi %s470_s9, %s12_s9  }
   0x2   : > { %p112_p1 = scmp.lt.s32.totalorder %s448_s9, 3 }
   0x4   : > { %p113_p2 = pnand %p377_p0, %p112_p1 }
   0x5   : > { %p134_p3 = scmp.lt.s32.totalorder (!%p113_p2), %s373_s10, 1  ;;  %s450_s19 = smov (!%p113_p2), 127  }
   0x6   : > { %116 = sbr.rel (%p113_p2) target bundleno = 605 (0x25d), region = 28  ;;  %s451_s20 = smov (!%p113_p2), 126  }
   0x7   : > { %s452_s21 = smov (!%p113_p2), 124   ;;  %s453_s22 = smov (!%p113_p2), 125  }
   0x8   : > { %s454_s28 = smov (!%p113_p2), 0.0  }
   0xb   : > { %s545_s10 = smov (!%p134_p3, %s373_s10), 1  ;;  %vm148_vm0 = vcmask 1041408   ;;  %v209_v34 = vld [vmem:[%s541_s0] sm:$0x7] }
   0xc   : > { %s385_s11 = sshll.u32 %s545_s10, 3  ;;  %215 = vrot.lane.b32.xlu1 %v209_v34, %s450_s19  ;;  %v246_v35 = vrot.slane %v209_v34, 1  ;;  %v282_v36 = vrot.slane %v209_v34, 2  ;;  %s386_s17 = smul.u32 6, %s545_s10 }
   0xd   : > { %s138_s14 = scalar_lea.vmem %s542_s1, %s385_s11 }
   0xe   : > { %v144_v0 = vld [vmem:[%s138_s14] sm:$0x3]  ;;  %v145_v1 = vld [vmem:[%s138_s14 + $0x2] sm:$0x3]  ;;  %v146_v2 = vld [vmem:[%s138_s14 + $0x4] sm:$0x3] }
   0xf   : > { %v147_v3 = vld [vmem:[%s138_s14 + $0x6] sm:$0x3]  ;;  %v149_v4 = vsel %vm148_vm0, %v144_v0, 0.0  ;;  %v150_v5 = vsel %vm148_vm0, %v145_v1, 0.0  ;;  %v152_v6 = vsel %vm148_vm0, %v146_v2, 0.0 }
  0x10   : > { %v151_v7 = vadd.f32 %v150_v5, %v149_v4  ;;  %v154_v8 = vsel %vm148_vm0, %v147_v3, 0.0  ;;  %222 = vrot.lane.b32.xlu1 %v209_v34, %s451_s20 }
  0x12   : > { %v153_v9 = vadd.f32 %v152_v6, %v151_v7 }
  0x14   : > { %v155_v10 = vadd.f32 %v154_v8, %v153_v9  ;;  %238 = vrot.lane.b32.xlu1 %v209_v34, %s452_s21 }
  0x16   : > { %156 = vadd.xlane.f32.xlu0 %v155_v10 }
  0x18   : > { %251 = vrot.lane.b32.xlu1 %v246_v35, %s450_s19 }
  0x1c   : > { %258 = vrot.lane.b32.xlu1 %v246_v35, %s451_s20 }
  0x20   : > { %265 = vrot.lane.b32.xlu1 %v246_v35, %s453_s22 }
  0x24   : > { %273 = vrot.lane.b32.xlu1 %v246_v35, %s452_s21 }
  0x28   : > { %287 = vrot.lane.b32.xlu1 %v282_v36, %s450_s19 }
  0x2c   : > { %301 = vrot.lane.b32.xlu1 %v282_v36, %s453_s22 }
  0x7e   : > { %v216_v50 = vpop.permute.xlu1 %215 }
  0x82   : > { %v223_v51 = vpop.permute.xlu1 %222 }
  0x86   : > { %v239_v52 = vpop.permute.xlu1 %238 }
  0x8a   : > { %v252_v53 = vpop.permute.xlu1 %251 }
  0x8e   : > { %v259_v55 = vpop.permute.xlu1 %258 }
  0x92   : > { %v266_v56 = vpop.permute.xlu1 %265 }
  0x96   : > { %v274_v58 = vpop.permute.xlu1 %273 }
  0x9a   : > { %v288_v60 = vpop.permute.xlu1 %287 }
  0x9e   : > { %v302_v62 = vpop.permute.xlu1 %301 }
  0x9f   : > { %v157_v11 = vpop.xlane.xlu0 %156 }
  0xa0   : > { %v158_v12 = vrot.slane %v157_v11, 4 }
  0xa2   : > { %v159_v13 = vadd.f32 %v158_v12, %v157_v11 }
  0xa4   : > { %v160_v14 = vrot.slane %v159_v13, 2 }
  0xa6   : > { %v161_v15 = vadd.f32 %v160_v14, %v159_v13 }
  0xa8   : > { %v162_v16 = vrot.slane %v161_v15, 1 }
  0xaa   : > { %v163_v17 = vadd.f32 %v162_v16, %v161_v15 }
  0xac   : > { %387 = vpush %v163_v17 }
  0xdd   : > { %s388_s15 = spop %387 }
  0xde   : > { %s488_s16 = smul.f32 0.0009765625, %s388_s15 }
  0xe0   : > { %v166_v18 = vstv %s488_s16  ;;  %s191_s23 = smul.f32 %s488_s16, %s488_s16 }
  0xe1   : > { %v491_v19 = vsub.f32 %v144_v0, %v166_v18  ;;  %v493_v20 = vsub.f32 %v145_v1, %v166_v18  ;;  %v495_v21 = vsub.f32 %v146_v2, %v166_v18  ;;  %v497_v22 = vsub.f32 %v147_v3, %v166_v18 }
  0xe2   : > { %s192_s24 = smul.f32 0.0, %s191_s23  ;;  %s143_s23 = scalar_lea.vmem %s543_s2, %s386_s17 }
  0xe3   : > { %v171_v23 = vmul.f32 %v491_v19, %v491_v19  ;;  %v172_v24 = vmul.f32 %v493_v20, %v493_v20  ;;  %v173_v25 = vmul.f32 %v495_v21, %v495_v21  ;;  %v174_v26 = vmul.f32 %v497_v22, %v497_v22 }
  0xe5   : > { %v175_v27 = vsel %vm148_vm0, %v171_v23, 0.0  ;;  %v176_v28 = vsel %vm148_vm0, %v172_v24, 0.0  ;;  %v178_v30 = vsel %vm148_vm0, %v173_v25, 0.0  ;;  %v180_v32 = vsel %vm148_vm0, %v174_v26, 0.0 }
  0xe6   : > { %v177_v29 = vadd.f32 %v176_v28, %v175_v27 }
  0xe8   : > { %v179_v31 = vadd.f32 %v178_v30, %v177_v29 }
  0xea   : > { %v181_v33 = vadd.f32 %v180_v32, %v179_v31 }
  0xec   : > { %182 = vadd.xlane.f32.xlu0 %v181_v33 }
 0x102   : > { %229 = vrot.lane.b32.xlu0 %v209_v34, %s453_s22 }
 0x106   : > { %294 = vrot.lane.b32.xlu0 %v282_v36, %s451_s20 }
 0x10a   : > { %309 = vrot.lane.b32.xlu0 %v282_v36, %s452_s21 }
 0x175   : > { %v183_v37 = vpop.xlane.xlu0 %182 }
 0x176   : > { %v184_v38 = vrot.slane %v183_v37, 4 }
 0x178   : > { %v185_v39 = vadd.f32 %v184_v38, %v183_v37 }
 0x179   : > { %v230_v59 = vpop.permute.xlu0 %229 }
 0x17a   : > { %v186_v40 = vrot.slane %v185_v39, 2 }
 0x17c   : > { %v187_v41 = vadd.f32 %v186_v40, %v185_v39 }
 0x17d   : > { %v295_v61 = vpop.permute.xlu0 %294 }
 0x17e   : > { %v188_v42 = vrot.slane %v187_v41, 1 }
 0x180   : > { %v189_v43 = vadd.f32 %v188_v42, %v187_v41 }
 0x181   : > { %v310_v63 = vpop.permute.xlu0 %309 }
 0x182   : > { %389 = vpush %v189_v43 }
 0x1b3   : > { %s390_s25 = spop %389 }
 0x1b4   : > { %s193_s26 = ssub.f32 %s390_s25, %s192_s24 }
 0x1b6   : > { %s194_s27 = smul.f32 0.0009775171, %s193_s26 }
 0x1b8   : > { %s195_s29 = smax.f32 %s454_s28, %s194_s27 }
 0x1b9   : > { %v196_v44 = vstv %s195_s29 }
 0x1ba   : > { %438 = vrsqrt.f32 %v196_v44  ;;  %vm199_vm1 = vcmp.eq.f32.partialorder %v196_v44, inf  ;;  %v202_v47 = vand.u32 2147483648, %v196_v44  ;;  %vm201_vm2 = vcmp.eq.f32.partialorder %v196_v44, 0.0 }
 0x1c7   : > { %v439_v45 = vpop.eup %438 }
 0x1c8   : > { %v198_v46 = vmul.f32 %v439_v45, %v196_v44 }
 0x1ca   : > { %v200_v48 = vsel %vm199_vm1, %v196_v44, %v198_v46 }
 0x1cb   : > { %v203_v49 = vsel %vm201_vm2, %v202_v47, %v200_v48 }
 0x1cc   : > { %391 = vpush %v203_v49 }
 0x1fd   : > { %s392_s30 = spop %391 }
 0x1fe   : > { %s205_s3 = sadd.f32 1e-06, %s392_s30 }
 0x200   : > { %v206_v54 = vstv %s205_s3 }
 0x201   : > { %440 = vrcp.f32 %v206_v54 }
 0x20e   : > { %v441_v57 = vpop.eup %440 }
 0x20f   : > { %393 = vpush %v441_v57 }
 0x210   : > { %395 = vpush %v209_v34 }
 0x211   : > { %397 = vpush %v216_v50 }
 0x212   : > { %399 = vpush %v223_v51 }
 0x213   : > { %401 = vpush %v230_v59 }
 0x214   : > { %403 = vpush %v239_v52 }
 0x215   : > { %405 = vpush %v246_v35 }
 0x216   : > { %407 = vpush %v252_v53 }
 0x217   : > { %409 = vpush %v259_v55 }
 0x218   : > { %411 = vpush %v266_v56 }
 0x219   : > { %413 = vpush %v274_v58 }
 0x21a   : > { %415 = vpush %v282_v36 }
 0x21b   : > { %417 = vpush %v288_v60 }
 0x21c   : > { %419 = vpush %v295_v61 }
 0x21d   : > { %421 = vpush %v302_v62 }
 0x21e   : > { %423 = vpush %v310_v63 }
 0x240   : > { %s394_s4 = spop %393 }
 0x241   : > { %s396_s5 = spop %395  ;;  %v236_v17 = vstv %s394_s4 }
 0x242   : > { %v212_v0 = vstv %s396_s5  ;;  %s398_s6 = spop %397 }
 0x243   : > { %v214_v1 = vmul.f32 %v212_v0, %v491_v19  ;;  %v218_v2 = vstv %s398_s6  ;;  %s400_s7 = spop %399 }
 0x244   : > { %v220_v3 = vmul.f32 %v218_v2, %v493_v20  ;;  %v225_v4 = vstv %s400_s7  ;;  %s402_s8 = spop %401 }
 0x245   : > { %v232_v5 = vstv %s402_s8  ;;  %s518_s11 = spop %403  ;;  %v227_v7 = vmul.f32 %v225_v4, %v495_v21 }
 0x246   : > { %v221_v6 = vadd.f32 %v220_v3, %v214_v1  ;;  %s406_s12 = spop %405  ;;  %v234_v10 = vmul.f32 %v232_v5, %v497_v22  ;;  %v241_v25 = vstv %s518_s11 }
 0x247   : > { %v248_v8 = vstv %s406_s12  ;;  %s408_s13 = spop %407 }
 0x248   : > { %v228_v9 = vadd.f32 %v227_v7, %v221_v6  ;;  %v250_v11 = vmul.f32 %v248_v8, %v491_v19  ;;  %v254_v12 = vstv %s408_s13  ;;  %s410_s14 = spop %409 }
 0x249   : > { %v256_v13 = vmul.f32 %v254_v12, %v493_v20  ;;  %v261_v14 = vstv %s410_s14  ;;  %s412_s15 = spop %411 }
 0x24a   : > { %v235_v15 = vadd.f32 %v234_v10, %v228_v9  ;;  %v268_v16 = vstv %s412_s15  ;;  %s524_s16 = spop %413  ;;  %v263_v23 = vmul.f32 %v261_v14, %v495_v21 }
 0x24b   : > { %v257_v18 = vadd.f32 %v256_v13, %v250_v11  ;;  %s416_s18 = spop %415  ;;  %v270_v28 = vmul.f32 %v268_v16, %v497_v22 }
 0x24c   : > { %v237_v24 = vmul.f32 %v236_v17, %v235_v15  ;;  %v284_v26 = vstv %s416_s18  ;;  %s418_s19 = spop %417 }
 0x24d   : > { %v264_v27 = vadd.f32 %v263_v23, %v257_v18  ;;  %v286_v29 = vmul.f32 %v284_v26, %v491_v19  ;;  %v290_v30 = vstv %s418_s19  ;;  %s420_s20 = spop %419  ;;  %v276_v19 = vstv %s524_s16 }
 0x24e   : > { %v243_v31 = vadd.f32 %v241_v25, %v237_v24  ;;  %v292_v32 = vmul.f32 %v290_v30, %v493_v20  ;;  %v297_v33 = vstv %s420_s20  ;;  %s422_s10 = spop %421 }
 0x24f   : > { %v271_v34 = vadd.f32 %v270_v28, %v264_v27  ;;  %v304_v35 = vstv %s422_s10  ;;  %v299_v38 = vmul.f32 %v297_v33, %v495_v21  ;;  %s424_s24 = spop %423 }
 0x250   : > { %v244_v36 = vmax.f32 %v243_v31, 0.0  ;;  %v293_v37 = vadd.f32 %v292_v32, %v286_v29  ;;  %v306_v41 = vmul.f32 %v304_v35, %v497_v22  ;;  %v312_v44 = vstv %s424_s24 }
 0x251   : > { %v272_v39 = vmul.f32 %v271_v34, %v236_v17 }
 0x252   : > { %245 = vst [vmem:[%s143_s23] sm:$0x3] %v244_v36  ;;  %v300_v40 = vadd.f32 %v299_v38, %v293_v37 }
 0x253   : > { %v278_v20 = vadd.f32 %v276_v19, %v272_v39 }
 0x254   : > { %v307_v42 = vadd.f32 %v306_v41, %v300_v40 }
 0x255   : > { %v279_v43 = vmax.f32 %v278_v20, 0.0 }
 0x256   : > { %v308_v45 = vmul.f32 %v307_v42, %v236_v17 }
 0x257   : > { %381 = vst [vmem:[%s143_s23 + $0x2] sm:$0x3] %v279_v43 }
 0x258   : > { %v314_v46 = vadd.f32 %v312_v44, %v308_v45 }
 0x25a   : > { %v315_v47 = vmax.f32 %v314_v46, 0.0 }
 0x25c   : > { %382 = vst [vmem:[%s143_s23 + $0x4] sm:$0x3] %v315_v47 }
 0x25d PF: > { %s12_s9 = sadd.s32 1, %s448_s9  }
 0x25e   : > { %p9_p4 = scmp.ge.s32.totalorder %s12_s9, 4  }
 0x260   :  { %11 = sbr.rel (!%p9_p4) target bundleno = 1 (0x1), region = 60 }

</bundles_post_ra>
